<compile_context>
chip_gen: v7x
topology: tpu7x:2x2x1
jax: 0.10.0
libtpu: 0.0.40
codegen_flags: <defaults>
</compile_context>

<pallas_src>
import functools

import jax
import jax.numpy as jnp
from jax.experimental import pallas as pl
from jax.experimental.pallas import tpu as pltpu


def _ffn_kernel(x_ref, w1_ref, w3_ref, w2_ref, o_ref, acc_ref):
    """One (token-tile, hidden-slice) step of the fused SwiGLU FFN.

    x_ref : [tm, dim]     token tile (resident across the hidden axis)
    w1_ref: [dim, th]     slice of W1^T
    w3_ref: [dim, th]     slice of W3^T
    w2_ref: [th, dim]     slice of W2^T
    o_ref : [tm, dim]     output tile (written on last hidden step)
    acc_ref:[tm, dim] f32 down-projection accumulator (VMEM scratch)
    """
    h = pl.program_id(1)

    @pl.when(h == 0)
    def _():
        acc_ref[...] = jnp.zeros_like(acc_ref)

    x = x_ref[...]

    # gate path: x @ W1^T slice  (f32 accumulation on the MXU)
    h1 = jnp.dot(x, w1_ref[...], preferred_element_type=jnp.float32)
    # value path: x @ W3^T slice
    h3 = jnp.dot(x, w3_ref[...], preferred_element_type=jnp.float32)
    # SwiGLU gating in f32 (sigmoid on the EUP, mul on the VPU)
    g = (h1 * jax.nn.sigmoid(h1)) * h3

    # partial down-projection for this hidden slice, accumulated in f32
    acc_ref[...] += jnp.dot(g.astype(w2_ref.dtype), w2_ref[...],
                            preferred_element_type=jnp.float32)

    @pl.when(h == pl.num_programs(1) - 1)
    def _():
        o_ref[...] = acc_ref[...].astype(o_ref.dtype)


def _round_up(x, m):
    return ((x + m - 1) // m) * m


def _pick_hidden_tile(hidden, target=512):
    """Largest 128-aligned divisor of `hidden` that is <= target (fallbacks ok)."""
    if hidden <= target:
        return hidden
    for cand in range((target // 128) * 128, 0, -128):
        if hidden % cand == 0:
            return cand
    for cand in range(target, 0, -1):
        if hidden % cand == 0:
            return cand
    return hidden


def convert_linear_weights(w1, w2, w3):
    """One-time layout conversion from nn.Linear weights to kernel layout.

    Call this once when loading parameters (NOT per forward call).
      w1, w3: [hidden, dim] -> [dim, hidden]
      w2:     [dim, hidden] -> [hidden, dim]
    """
    return w1.T, w2.T, w3.T


@functools.partial(jax.jit, static_argnames=("tm", "th"))
def feed_forward(x, w1_t, w2_t, w3_t, *, tm=256, th=None):
    """Fused SwiGLU FFN.

    x   : [batch, seq, dim]
    w1_t: [dim, hidden]   (pre-transposed W1)
    w2_t: [hidden, dim]   (pre-transposed W2)
    w3_t: [dim, hidden]   (pre-transposed W3)
    tm  : token tile (multiple of 128/256 recommended for v5e / v6e+v7x)
    th  : hidden tile (defaults to a 128-aligned divisor of hidden <= 512)
    """
    batch, seq, dim = x.shape
    hidden = w1_t.shape[1]

    tokens = batch * seq
    x2d = x.reshape(tokens, dim)

    if th is None:
        th = _pick_hidden_tile(hidden)
    assert hidden % th == 0, "hidden tile must divide the hidden dimension"

    # Token tiling with padding (no divisibility requirement on the caller).
    if tokens >= tm:
        tm_eff = tm
    else:
        tm_eff = _round_up(tokens, 8)  # small inputs: one sublane-aligned tile
    padded_tokens = _round_up(tokens, tm_eff)
    if padded_tokens != tokens:
        x2d = jnp.pad(x2d, ((0, padded_tokens - tokens), (0, 0)))

    n_t = padded_tokens // tm_eff
    n_h = hidden // th

    # Advisory cost estimate for XLA's scheduler (roofline documentation).
    w_bytes = (w1_t.size * w1_t.dtype.itemsize
               + w3_t.size * w3_t.dtype.itemsize
               + w2_t.size * w2_t.dtype.itemsize)
    cost = pl.CostEstimate(
        flops=2 * tokens * dim * hidden * 3,
        transcendentals=tokens * hidden,
        bytes_accessed=(x2d.size * x2d.dtype.itemsize
                        + w_bytes
                        + tokens * dim * x.dtype.itemsize),
    )

    # VMEM budget: double-buffered x/out tiles and weight slices, f32
    # accumulator, f32 intermediates.  Clamp to v7x's 64 MiB physical VMEM.
    act_bytes = x.dtype.itemsize
    wgt_bytes = w1_t.dtype.itemsize
    vmem_est = (2 * tm_eff * dim * act_bytes          # x tile, double-buffered
                + 2 * 2 * dim * th * wgt_bytes        # w1/w3 slices, 2x buffered
                + 2 * th * dim * wgt_bytes            # w2 slice, 2x buffered
                + 2 * tm_eff * dim * act_bytes        # out tile, 2x buffered
                + tm_eff * dim * 4                    # f32 accumulator
                + 3 * tm_eff * th * 4)                # h1/h3/g intermediates
    vmem_limit = min(max(2 * vmem_est, 32 * 1024 * 1024), 64 * 1024 * 1024)

    out2d = pl.pallas_call(
        _ffn_kernel,
        out_shape=jax.ShapeDtypeStruct((padded_tokens, dim), x.dtype),
        grid_spec=pltpu.PrefetchScalarGridSpec(
            num_scalar_prefetch=0,
            grid=(n_t, n_h),  # tokens (parallel) outer, hidden (reduction) last
            in_specs=[
                pl.BlockSpec((tm_eff, dim), lambda i, h: (i, 0)),  # x tile
                pl.BlockSpec((dim, th),     lambda i, h: (0, h)),  # W1^T slice
                pl.BlockSpec((dim, th),     lambda i, h: (0, h)),  # W3^T slice
                pl.BlockSpec((th, dim),     lambda i, h: (h, 0)),  # W2^T slice
            ],
            out_specs=pl.BlockSpec((tm_eff, dim), lambda i, h: (i, 0)),
            scratch_shapes=[pltpu.VMEM((tm_eff, dim), jnp.float32)],
        ),
        compiler_params=pltpu.CompilerParams(
            dimension_semantics=("parallel", "arbitrary"),
            vmem_limit_bytes=vmem_limit,
        ),
        cost_estimate=cost,
    )(x2d, w1_t, w3_t, w2_t)

    if padded_tokens != tokens:
        out2d = out2d[:tokens]
    return out2d.reshape(batch, seq, dim)


def _llama_hidden_dim(dim, multiple_of, ffn_dim_multiplier=None):
    hidden_dim = 4 * dim
    hidden_dim = int(2 * hidden_dim / 3)
    if ffn_dim_multiplier is not None:
        hidden_dim = int(ffn_dim_multiplier * hidden_dim)
    hidden_dim = multiple_of * ((hidden_dim + multiple_of - 1) // multiple_of)
    return hidden_dim


if __name__ == "__main__":
    # Small ModelArgs-consistent config (tile-aligned on the lane axis).
    dim = 128
    multiple_of = 128
    hidden = _llama_hidden_dim(dim, multiple_of)  # = 384
    batch, seq = 2, 8

    key = jax.random.PRNGKey(0)
    kx, k1, k2, k3 = jax.random.split(key, 4)

    x = jax.random.normal(kx, (batch, seq, dim), dtype=jnp.float32)
    # nn.Linear weight shapes: w1,w3 -> [hidden, dim], w2 -> [dim, hidden]
    w1 = jax.random.normal(k1, (hidden, dim), dtype=jnp.float32) * 0.02
    w2 = jax.random.normal(k2, (dim, hidden), dtype=jnp.float32) * 0.02
    w3 = jax.random.normal(k3, (hidden, dim), dtype=jnp.float32) * 0.02

    # One-time layout conversion (parameter-load time, outside the hot path).
    w1_t, w2_t, w3_t = convert_linear_weights(w1, w2, w3)

    # Pure-JAX reference.
    def ref(x):
        h1 = x @ w1.T
        swish = h1 * jax.nn.sigmoid(h1)
        h3 = x @ w3.T
        return (swish * h3) @ w2.T

    expected = ref(x)

    # 1) Default (production) tile sizes — small input exercises the padding /
    #    single-tile path.
    out = feed_forward(x, w1_t, w2_t, w3_t)
    jax.block_until_ready(out)
    assert out.shape == (batch, seq, dim)
    assert jnp.allclose(out, expected, atol=1e-4, rtol=1e-4)

    # 2) Small explicit tiles to exercise the multi-tile grid and the hidden
    #    reduction / accumulator path at this toy shape (n_t=2, n_h=3).
    out_tiled = feed_forward(x, w1_t, w2_t, w3_t, tm=8, th=128)
    jax.block_until_ready(out_tiled)
    assert jnp.allclose(out_tiled, expected, atol=1e-4, rtol=1e-4)

    # 3) bf16 fast path (matmuls in bf16 on the MXU, f32 accumulation/gating).
    out_bf16 = feed_forward(x.astype(jnp.bfloat16),
                            w1_t.astype(jnp.bfloat16),
                            w2_t.astype(jnp.bfloat16),
                            w3_t.astype(jnp.bfloat16),
                            tm=8, th=128)
    jax.block_until_ready(out_bf16)
    assert out_bf16.dtype == jnp.bfloat16
    assert jnp.allclose(out_bf16.astype(jnp.float32), expected,
                        atol=5e-2, rtol=5e-2)

    print("KERNEL_OK")
</pallas_src>

<mosaic_0001>
module attributes {stable_mosaic.version = 11 : i64} {
  func.func @_ffn_kernel(%arg0: i32, %arg1: i32, %arg2: memref<16x128xf32, #tpu.memory_space<vmem>>, %arg3: memref<128x384xf32, #tpu.memory_space<vmem>>, %arg4: memref<128x384xf32, #tpu.memory_space<vmem>>, %arg5: memref<384x128xf32, #tpu.memory_space<vmem>>, %arg6: memref<16x128xf32, #tpu.memory_space<vmem>>, %arg7: memref<16x128xf32, #tpu.memory_space<vmem>>) attributes {dimension_semantics = [#tpu.dimension_semantics<parallel>, #tpu.dimension_semantics<arbitrary>], iteration_bounds = array<i64: 1, 1>, scalar_prefetch = 0 : i64, scratch_operands = 1 : i64, tpu.core_type = #tpu.core_type<tc>, window_params = [{transform_indices = @transform_0, window_bounds = array<i64: 16, 128>}, {transform_indices = @transform_1, window_bounds = array<i64: 128, 384>}, {transform_indices = @transform_2, window_bounds = array<i64: 128, 384>}, {transform_indices = @transform_3, window_bounds = array<i64: 384, 128>}, {transform_indices = @transform_4, window_bounds = array<i64: 16, 128>}]} {
    %c0_i32 = arith.constant 0 : i32
    %0 = arith.cmpi eq, %arg1, %c0_i32 : i32
    %1 = arith.extui %0 : i1 to i32
    %c0_i32_0 = arith.constant 0 : i32
    %2 = arith.cmpi ne, %1, %c0_i32_0 : i32
    scf.if %2 {
      %cst_17 = arith.constant 0.000000e+00 : f32
      %23 = vector.broadcast %cst_17 : f32 to vector<16x128xf32>
      %c0_18 = arith.constant 0 : index
      %c0_19 = arith.constant 0 : index
      %24 = vector.load %arg7[%c0_18, %c0_19] : memref<16x128xf32, #tpu.memory_space<vmem>>, vector<16x128xf32>
      tpu.vector_store %arg7[%c0_18, %c0_19], %23 {strides = array<i32>} : memref<16x128xf32, #tpu.memory_space<vmem>>, vector<16x128xf32>,
    } else {
    }
    %c0 = arith.constant 0 : index
    %c0_1 = arith.constant 0 : index
    %3 = vector.load %arg2[%c0, %c0_1] : memref<16x128xf32, #tpu.memory_space<vmem>>, vector<16x128xf32>
    %c0_2 = arith.constant 0 : index
    %c0_3 = arith.constant 0 : index
    %4 = vector.load %arg3[%c0_2, %c0_3] : memref<128x384xf32, #tpu.memory_space<vmem>>, vector<128x384xf32>
    %cst = arith.constant dense<0.000000e+00> : vector<16x384xf32>
    %5 = tpu.matmul %3, %4, %cst {dimension_numbers = #tpu.dot_dimension_numbers<[1], [0], [0], [1], [0, 0, 1, 1], [], []>} : vector<16x128xf32>, vector<128x384xf32>, vector<16x384xf32> -> vector<16x384xf32>
    %c0_4 = arith.constant 0 : index
    %c0_5 = arith.constant 0 : index
    %6 = vector.load %arg4[%c0_4, %c0_5] : memref<128x384xf32, #tpu.memory_space<vmem>>, vector<128x384xf32>
    %cst_6 = arith.constant dense<0.000000e+00> : vector<16x384xf32>
    %7 = tpu.matmul %3, %6, %cst_6 {dimension_numbers = #tpu.dot_dimension_numbers<[1], [0], [0], [1], [0, 0, 1, 1], [], []>} : vector<16x128xf32>, vector<128x384xf32>, vector<16x384xf32> -> vector<16x384xf32>
    %8 = arith.negf %5 : vector<16x384xf32>
    %9 = math.exp %8 : vector<16x384xf32>
    %cst_7 = arith.constant 1.000000e+00 : f32
    %10 = vector.broadcast %cst_7 : f32 to vector<16x384xf32>
    %11 = arith.addf %10, %9 : vector<16x384xf32>
    %12 = arith.divf %10, %11 : vector<16x384xf32>
    %13 = arith.mulf %5, %12 : vector<16x384xf32>
    %14 = arith.mulf %13, %7 : vector<16x384xf32>
    %c0_8 = arith.constant 0 : index
    %c0_9 = arith.constant 0 : index
    %15 = vector.load %arg7[%c0_8, %c0_9] : memref<16x128xf32, #tpu.memory_space<vmem>>, vector<16x128xf32>
    %c0_10 = arith.constant 0 : index
    %c0_11 = arith.constant 0 : index
    %16 = vector.load %arg5[%c0_10, %c0_11] : memref<384x128xf32, #tpu.memory_space<vmem>>, vector<384x128xf32>
    %cst_12 = arith.constant dense<0.000000e+00> : vector<16x128xf32>
    %17 = tpu.matmul %14, %16, %cst_12 {dimension_numbers = #tpu.dot_dimension_numbers<[1], [0], [0], [1], [0, 0, 1, 1], [], []>} : vector<16x384xf32>, vector<384x128xf32>, vector<16x128xf32> -> vector<16x128xf32>
    %18 = arith.addf %15, %17 : vector<16x128xf32>
    %c0_13 = arith.constant 0 : index
    %c0_14 = arith.constant 0 : index
    %19 = vector.load %arg7[%c0_13, %c0_14] : memref<16x128xf32, #tpu.memory_space<vmem>>, vector<16x128xf32>
    tpu.vector_store %arg7[%c0_13, %c0_14], %18 {strides = array<i32>} : memref<16x128xf32, #tpu.memory_space<vmem>>, vector<16x128xf32>,
    %c0_i32_15 = arith.constant 0 : i32
    %20 = arith.cmpi eq, %arg1, %c0_i32_15 : i32
    %21 = arith.extui %20 : i1 to i32
    %c0_i32_16 = arith.constant 0 : i32
    %22 = arith.cmpi ne, %21, %c0_i32_16 : i32
    scf.if %22 {
      %c0_17 = arith.constant 0 : index
      %c0_18 = arith.constant 0 : index
      %23 = vector.load %arg7[%c0_17, %c0_18] : memref<16x128xf32, #tpu.memory_space<vmem>>, vector<16x128xf32>
      %c0_19 = arith.constant 0 : index
      %c0_20 = arith.constant 0 : index
      %24 = vector.load %arg6[%c0_19, %c0_20] : memref<16x128xf32, #tpu.memory_space<vmem>>, vector<16x128xf32>
      tpu.vector_store %arg6[%c0_19, %c0_20], %23 {strides = array<i32>} : memref<16x128xf32, #tpu.memory_space<vmem>>, vector<16x128xf32>,
    } else {
    }
    return
  }
  func.func @transform_0(%arg0: i32, %arg1: i32) -> (i32, i32) {
    %c0_i32 = arith.constant 0 : i32
    %c0_i32_0 = arith.constant 0 : i32
    return %arg0, %c0_i32 : i32, i32
  }
  func.func @transform_1(%arg0: i32, %arg1: i32) -> (i32, i32) {
    %c0_i32 = arith.constant 0 : i32
    %c0_i32_0 = arith.constant 0 : i32
    return %c0_i32, %arg1 : i32, i32
  }
  func.func @transform_2(%arg0: i32, %arg1: i32) -> (i32, i32) {
    %c0_i32 = arith.constant 0 : i32
    %c0_i32_0 = arith.constant 0 : i32
    return %c0_i32, %arg1 : i32, i32
  }
  func.func @transform_3(%arg0: i32, %arg1: i32) -> (i32, i32) {
    %c0_i32 = arith.constant 0 : i32
    %c0_i32_0 = arith.constant 0 : i32
    return %arg1, %c0_i32 : i32, i32
  }
  func.func @transform_4(%arg0: i32, %arg1: i32) -> (i32, i32) {
    %c0_i32 = arith.constant 0 : i32
    %c0_i32_0 = arith.constant 0 : i32
    return %arg0, %c0_i32 : i32, i32
  }
}

</mosaic_0001>

<bundles_post_ra>
// kernel: feed_forward.1
= control target key start
LH: loop header
LB: loop body
LE: loop exit
PB: predicated region body
PF: predicated region fallthrough
CT: control target
= control target key end

     0   :  { %9 = vsyncpa [#allocation4], 0  ;;  %s1439_s0 = inlined_call_operand.hbm [shape: f32[16,128], index: 0, kind: input, shape index: {}]   ;;  %s1440_s1 = inlined_call_operand.hbm [shape: f32[128,384], index: 1, kind: input, shape index: {}]   ;;  %s1441_s2 = inlined_call_operand.hbm [shape: f32[128,384], index: 2, kind: input, shape index: {}]   ;;  %s1442_s3 = inlined_call_operand.hbm [shape: f32[384,128], index: 3, kind: input, shape index: {}]   ;;  %s1443_s4 = inlined_call_operand.hbm [shape: f32[16,128], index: 4, kind: output, shape index: {}]  }
   0x1   :  { %10 = vsyncpa [#allocation7], 0 }
   0x2   :  { %11 = vsyncpa [#allocation10], 0 }
   0x3   :  { %12 = vsyncpa [#allocation5], 0  ;;  %s1306_s15 = smov [#allocation6]   ;;  %s1188_s19 = scalar_lea.hbm %s1440_s1, 6144 }
   0x4   :  { %s30_s16 = sshll.u32 %s1306_s15, 4  ;;  %p1189_p0 = scmp.ne.s32.totalorder %s1440_s1, %s1188_s19  ;;  %s31_s16 = int_to_ptr.vmem [resolvable:$true] %s30_s16 }
   0x5   :  { %p1192_p1 = scmp.lt.u32.totalorder %s1188_s19, %s1440_s1 }
   0x7   :  { %p1194_p2 = pnand %p1192_p1, %p1189_p0 }
   0x9   :  { %1197 = shalt.err (!%p1194_p2)
}
   0xa   :  { %s1198_s24 = scalar_lea.vmem %s31_s16, 6144  ;;  %p1203_p4 = scmp.lt.s32.totalorder %s31_s16, %s31_s16 }
   0xb   :  { %p1199_p3 = scmp.ne.s32.totalorder %s31_s16, %s1198_s24  ;;  %p1204_p5 = scmp.lt.s32.totalorder %s1198_s24, %s1198_s24 }
   0xd   :  { %p1205_p6 = por %p1204_p5, %p1203_p4 }
   0xf   :  { %p1206_p7 = pnand %p1205_p6, %p1199_p3 }
  0x11   :  { %1209 = shalt.err (!%p1206_p7)
}
  0x12   :  { %s1307_s25 = smov 384   ;;  %s1308_s26 = smov 24  }
  0x13   :  { %36 = dma.hbm_to_vmem [thread:$0]  %s1440_s1, 6144, %s31_s16, [#allocation7], %s1307_s25, %s1307_s25, %s1308_s26  }
  0x14   :  { %s1309_s29 = smov [#allocation3]   ;;  %s1210_s7 = scalar_lea.hbm %s1439_s0, 256 }
  0x15   :  { %s18_s30 = sshll.u32 %s1309_s29, 4  ;;  %p1211_p8 = scmp.ne.s32.totalorder %s1439_s0, %s1210_s7  ;;  %s19_s30 = int_to_ptr.vmem [resolvable:$true] %s18_s30 }
  0x16   :  { %p1214_p9 = scmp.lt.u32.totalorder %s1210_s7, %s1439_s0 }
  0x18   :  { %p1216_p10 = pnand %p1214_p9, %p1211_p8 }
  0x1a   :  { %1219 = shalt.err (!%p1216_p10)
}
  0x1b   :  { %s1220_s12 = scalar_lea.vmem %s19_s30, 256  ;;  %p1225_p12 = scmp.lt.s32.totalorder %s19_s30, %s19_s30 }
  0x1c   :  { %p1221_p11 = scmp.ne.s32.totalorder %s19_s30, %s1220_s12  ;;  %p1226_p13 = scmp.lt.s32.totalorder %s1220_s12, %s1220_s12 }
  0x1e   :  { %p1227_p0 = por %p1226_p13, %p1225_p12 }
  0x20   :  { %p1228_p1 = pnand %p1227_p0, %p1221_p11 }
  0x22   :  { %1231 = shalt.err (!%p1228_p1)
}
  0x23   :  { %s1310_s1 = smov 128   ;;  %s1311_s13 = smov 8  }
  0x24   :  { %24 = dma.hbm_to_vmem [thread:$0]  %s1439_s0, 256, %s19_s30, [#allocation4], %s1310_s1, %s1310_s1, %s1311_s13  }
  0x25   :  { %s1312_s16 = smov [#allocation8]   ;;  %s1313_s18 = smov [#allocation9]  }
  0x26   :  { %s42_s17 = sshll.u32 %s1312_s16, 4  ;;  %s54_s19 = sshll.u32 %s1313_s18, 4  ;;  %s43_s17 = int_to_ptr.vmem [resolvable:$true] %s42_s17  ;;  %s1371_s19 = int_to_ptr.vmem [resolvable:$true] %s54_s19 }
  0x27   :  { %s1232_s22 = scalar_lea.hbm %s1441_s2, 6144 }
  0x28   :  { %p1233_p2 = scmp.ne.s32.totalorder %s1441_s2, %s1232_s22  ;;  %p1236_p3 = scmp.lt.u32.totalorder %s1232_s22, %s1441_s2 }
  0x2a   :  { %p1238_p4 = pnand %p1236_p3, %p1233_p2 }
  0x2c   :  { %1241 = shalt.err (!%p1238_p4)
}
  0x2d   :  { %s1242_s0 = scalar_lea.vmem %s43_s17, 6144  ;;  %p1247_p6 = scmp.lt.s32.totalorder %s43_s17, %s43_s17 }
  0x2e   :  { %p1243_p5 = scmp.ne.s32.totalorder %s43_s17, %s1242_s0  ;;  %p1248_p7 = scmp.lt.s32.totalorder %s1242_s0, %s1242_s0 }
  0x30   :  { %p1249_p8 = por %p1248_p7, %p1247_p6 }
  0x32   :  { %p1250_p9 = pnand %p1249_p8, %p1243_p5 }
  0x34   :  { %1253 = shalt.err (!%p1250_p9)
}
  0x35   :  { %48 = dma.hbm_to_vmem [thread:$0]  %s1441_s2, 6144, %s43_s17, [#allocation7], %s1307_s25, %s1307_s25, %s1308_s26  }
  0x36   :  { %s1254_s7 = scalar_lea.hbm %s1442_s3, 6144 }
  0x37   :  { %p1255_p10 = scmp.ne.s32.totalorder %s1442_s3, %s1254_s7  ;;  %p1258_p11 = scmp.lt.u32.totalorder %s1254_s7, %s1442_s3 }
  0x39   :  { %p1260_p12 = pnand %p1258_p11, %p1255_p10 }
  0x3b   :  { %1263 = shalt.err (!%p1260_p12)
}
  0x3c   :  { %s1264_s12 = scalar_lea.vmem %s1371_s19, 6144  ;;  %p1269_p0 = scmp.lt.s32.totalorder %s1371_s19, %s1371_s19 }
  0x3d   :  { %p1265_p13 = scmp.ne.s32.totalorder %s1371_s19, %s1264_s12  ;;  %p1270_p1 = scmp.lt.s32.totalorder %s1264_s12, %s1264_s12 }
  0x3f   :  { %p1271_p2 = por %p1270_p1, %p1269_p0 }
  0x41   :  { %p1272_p3 = pnand %p1271_p2, %p1265_p13 }
  0x43   :  { %1275 = shalt.err (!%p1272_p3)
}
  0x44   :  { %60 = dma.hbm_to_vmem [thread:$0]  %s1442_s3, 6144, %s1371_s19, [#allocation10], %s1310_s1, %s1310_s1, %s1311_s13  }
  0x45   :  { %1298 = dma.done.wait [#allocation4], 256  }
  0x46   :  { %1299 = vsyncadd [#allocation4], 4294967040 }
  0x47   :  { %1300 = dma.done.wait [#allocation7], 12288  }
  0x48   :  { %1301 = vsyncadd [#allocation7], 4294955008 }
  0x49   :  { %1302 = dma.done.wait [#allocation10], 6144  }
  0x4a   :  { %1303 = vsyncadd [#allocation10], 4294961152  ;;  %v1314_v0 = vmov 0.0   ;;  %v82_v1 = vld [vmem:[#allocation6 + $0x8] sm:$0xff]  ;;  %v85_v2 = vld [vmem:[#allocation6 + $0x20] sm:$0xff]  ;;  %s1315_s3 = smov [#allocation11]  }
  0x4b   :  { %193 = vmatprep.mubr.f32.mxu0 %v1314_v0  ;;  %v83_v3 = vld [vmem:[#allocation6 + $0x10] sm:$0xff]  ;;  %v962_v4 = vpack.c.bf16 %v85_v2, %v82_v1  ;;  %v86_v5 = vld [vmem:[#allocation6 + $0x28] sm:$0xff]  ;;  %v81_v6 = vld [vmem:[#allocation6] sm:$0xff]  ;;  %s745_s26 = sshll.u32 %s1315_s3, 4  ;;  %s746_s26 = int_to_ptr.vmem [resolvable:$true] %s745_s26 }
  0x4c   :  { %v84_v7 = vld [vmem:[#allocation6 + $0x18] sm:$0xff]  ;;  %v994_v8 = vpack.c.bf16 %v86_v5, %v83_v3  ;;  %v91_v11 = vld [vmem:[#allocation6 + $0x50] sm:$0xff]  ;;  %v89_v12 = vld [vmem:[#allocation6 + $0x40] sm:$0xff]  ;;  %s1276_s14 = scalar_lea.vmem %s746_s26, 256  ;;  %p1281_p5 = scmp.lt.s32.totalorder %s746_s26, %s746_s26 }
  0x4d   :  { %v964_v9 = vpack.c.bf16 %v84_v7, %v81_v6  ;;  %v88_v10 = vld [vmem:[#allocation6 + $0x38] sm:$0xff]  ;;  %963 = vmatprep.subr.bf16.mxu0 %v962_v4  ;;  %v87_v15 = vld [vmem:[#allocation6 + $0x30] sm:$0xff]  ;;  %v90_v16 = vld [vmem:[#allocation6 + $0x48] sm:$0xff]  ;;  %p1277_p4 = scmp.ne.s32.totalorder %s746_s26, %s1276_s14  ;;  %p1282_p6 = scmp.lt.s32.totalorder %s1276_s14, %s1276_s14 }
  0x4e   :  { %v966_v13 = vpack.c.bf16 %v91_v11, %v88_v10  ;;  %v92_v14 = vld [vmem:[#allocation6 + $0x58] sm:$0xff]  ;;  %995 = vmatprep.subr.bf16.mxu1 %v994_v8  ;;  %v968_v18 = vpack.c.bf16 %v90_v16, %v87_v15  ;;  %v94_v19 = vld [vmem:[#allocation6 + $0x68] sm:$0xff]  ;;  %v97_v20 = vld [vmem:[#allocation6 + $0x80] sm:$0xff] }
  0x4f   :  { %965 = vmatpush1.bf16.msra.mxu0 %v964_v9  ;;  %v998_v17 = vpack.c.bf16 %v92_v14, %v89_v12  ;;  %v95_v21 = vld [vmem:[#allocation6 + $0x70] sm:$0xff]  ;;  %997 = vmatpush3.bf16.msra.mxu1 %v994_v8  ;;  %v970_v22 = vpack.c.bf16 %v97_v20, %v94_v19  ;;  %v98_v23 = vld [vmem:[#allocation6 + $0x88] sm:$0xff]  ;;  %v93_v24 = vld [vmem:[#allocation6 + $0x60] sm:$0xff]  ;;  %p1283_p7 = por %p1282_p6, %p1281_p5 }
  0x50   :  { %967 = vmatprep.subr.bf16.mxu0 %v966_v13  ;;  %v96_v25 = vld [vmem:[#allocation6 + $0x78] sm:$0xff]  ;;  %v1002_v26 = vpack.c.bf16 %v98_v23, %v95_v21  ;;  %v103_v28 = vld [vmem:[#allocation6 + $0xb0] sm:$0xff]  ;;  %v101_v29 = vld [vmem:[#allocation6 + $0xa0] sm:$0xff] }
  0x51   :  { %999 = vmatprep.subr.bf16.mxu1 %v998_v17  ;;  %v100_v27 = vld [vmem:[#allocation6 + $0x98] sm:$0xff]  ;;  %v972_v31 = vpack.c.bf16 %v96_v25, %v93_v24  ;;  %v99_v33 = vld [vmem:[#allocation6 + $0x90] sm:$0xff]  ;;  %v102_v34 = vld [vmem:[#allocation6 + $0xa8] sm:$0xff]  ;;  %p1284_p8 = pnand %p1283_p7, %p1277_p4 }
  0x52   :  { %v104_v30 = vld [vmem:[#allocation6 + $0xb8] sm:$0xff]  ;;  %v974_v32 = vpack.c.bf16 %v103_v28, %v100_v27  ;;  %v106_v36 = vld [vmem:[#allocation6 + $0xc8] sm:$0xff]  ;;  %v109_v37 = vld [vmem:[#allocation6 + $0xe0] sm:$0xff]  ;;  %v976_v40 = vpack.c.bf16 %v102_v34, %v99_v33 }
  0x53   :  { %969 = vmatpush1.bf16.msra.mxu0 %v968_v18  ;;  %1001 = vmatpush3.bf16.msra.mxu1 %v998_v17  ;;  %v1006_v35 = vpack.c.bf16 %v104_v30, %v101_v29  ;;  %v107_v38 = vld [vmem:[#allocation6 + $0xd0] sm:$0xff]  ;;  %v110_v39 = vld [vmem:[#allocation6 + $0xe8] sm:$0xff]  ;;  %v978_v41 = vpack.c.bf16 %v109_v37, %v106_v36  ;;  %v105_v42 = vld [vmem:[#allocation6 + $0xc0] sm:$0xff] }
  0x54   :  { %971 = vmatprep.subr.bf16.mxu0 %v970_v22  ;;  %1003 = vmatprep.subr.bf16.mxu1 %v1002_v26  ;;  %v108_v43 = vld [vmem:[#allocation6 + $0xd8] sm:$0xff]  ;;  %v1010_v44 = vpack.c.bf16 %v110_v39, %v107_v38  ;;  %v115_v46 = vld [vmem:[#allocation6 + $0x110] sm:$0xff]  ;;  %v113_v47 = vld [vmem:[#allocation6 + $0x100] sm:$0xff] }
  0x55   :  { %v112_v45 = vld [vmem:[#allocation6 + $0xf8] sm:$0xff]  ;;  %v980_v49 = vpack.c.bf16 %v108_v43, %v105_v42  ;;  %v1409_v50 = vld [vmem:[#allocation3] sm:$0xff]  ;;  %v114_v53 = vld [vmem:[#allocation6 + $0x108] sm:$0xff] }
  0x56   :  { %v116_v48 = vld [vmem:[#allocation6 + $0x118] sm:$0xff]  ;;  %v982_v51 = vpack.c.bf16 %v115_v46, %v112_v45  ;;  %v111_v52 = vld [vmem:[#allocation6 + $0xf0] sm:$0xff]  ;;  %v118_v55 = vld [vmem:[#allocation6 + $0x128] sm:$0xff]  ;;  %889 = vmatprep.mubr.f32.mxu1 %v1409_v50 }
  0x57   :  { %973 = vmatpush1.bf16.msra.mxu0 %v972_v31  ;;  %1005 = vmatpush3.bf16.msra.mxu1 %v1002_v26  ;;  %v1014_v54 = vpack.c.bf16 %v116_v48, %v113_v47  ;;  %v121_v56 = vld [vmem:[#allocation6 + $0x140] sm:$0xff]  ;;  %v119_v57 = vld [vmem:[#allocation6 + $0x130] sm:$0xff]  ;;  %v122_v58 = vld [vmem:[#allocation6 + $0x148] sm:$0xff]  ;;  %v984_v59 = vpack.c.bf16 %v114_v53, %v111_v52 }
  0x58   :  { %975 = vmatprep.subr.bf16.mxu0 %v974_v32  ;;  %1007 = vmatprep.subr.bf16.mxu1 %v1006_v35  ;;  %v986_v60 = vpack.c.bf16 %v121_v56, %v118_v55  ;;  %v117_v61 = vld [vmem:[#allocation6 + $0x120] sm:$0xff]  ;;  %v120_v62 = vld [vmem:[#allocation6 + $0x138] sm:$0xff]  ;;  %v1018_v63 = vpack.c.bf16 %v122_v58, %v119_v57  ;;  %v127_v2 = vld [vmem:[#allocation6 + $0x170] sm:$0xff] }
  0x59   :  { %v124_v1 = vld [vmem:[#allocation6 + $0x158] sm:$0xff]  ;;  %v125_v3 = vld [vmem:[#allocation6 + $0x160] sm:$0xff]  ;;  %v988_v5 = vpack.c.bf16 %v120_v62, %v117_v61  ;;  %v123_v7 = vld [vmem:[#allocation6 + $0x150] sm:$0xff] }
  0x5a   :  { %v128_v4 = vld [vmem:[#allocation6 + $0x178] sm:$0xff]  ;;  %v990_v6 = vpack.c.bf16 %v127_v2, %v124_v1  ;;  %v126_v8 = vld [vmem:[#allocation6 + $0x168] sm:$0xff]  ;;  %v285_v11 = vld [vmem:[#allocation8 + $0x20] sm:$0xff] }
  0x5b   :  { %977 = vmatpush1.bf16.msra.mxu0 %v976_v40  ;;  %1009 = vmatpush3.bf16.msra.mxu1 %v1006_v35  ;;  %v1022_v9 = vpack.c.bf16 %v128_v4, %v125_v3  ;;  %v282_v10 = vld [vmem:[#allocation8 + $0x8] sm:$0xff]  ;;  %v283_v12 = vld [vmem:[#allocation8 + $0x10] sm:$0xff]  ;;  %v992_v14 = vpack.c.bf16 %v126_v8, %v123_v7  ;;  %v281_v16 = vld [vmem:[#allocation8] sm:$0xff] }
  0x5c   :  { %979 = vmatprep.subr.bf16.mxu0 %v978_v41  ;;  %1011 = vmatprep.subr.bf16.mxu1 %v1010_v44  ;;  %v286_v13 = vld [vmem:[#allocation8 + $0x28] sm:$0xff]  ;;  %v1026_v15 = vpack.c.bf16 %v285_v11, %v282_v10  ;;  %v284_v17 = vld [vmem:[#allocation8 + $0x18] sm:$0xff]  ;;  %v291_v20 = vld [vmem:[#allocation8 + $0x50] sm:$0xff] }
  0x5d   :  { %v1058_v18 = vpack.c.bf16 %v286_v13, %v283_v12  ;;  %v288_v19 = vld [vmem:[#allocation8 + $0x38] sm:$0xff]  ;;  %v289_v21 = vld [vmem:[#allocation8 + $0x40] sm:$0xff]  ;;  %v1028_v23 = vpack.c.bf16 %v284_v17, %v281_v16  ;;  %v287_v25 = vld [vmem:[#allocation8 + $0x30] sm:$0xff] }
  0x5e   :  { %v292_v22 = vld [vmem:[#allocation8 + $0x58] sm:$0xff]  ;;  %v290_v26 = vld [vmem:[#allocation8 + $0x48] sm:$0xff]  ;;  %v1030_v27 = vpack.c.bf16 %v291_v20, %v288_v19  ;;  %v297_v30 = vld [vmem:[#allocation8 + $0x80] sm:$0xff] }
  0x5f   :  { %981 = vmatpush1.bf16.msra.mxu0 %v980_v49  ;;  %1013 = vmatpush3.bf16.msra.mxu1 %v1010_v44  ;;  %v1412_v24 = vld [vmem:[#allocation3 + $0x8] sm:$0xff]  ;;  %v1062_v28 = vpack.c.bf16 %v292_v22, %v289_v21  ;;  %v294_v29 = vld [vmem:[#allocation8 + $0x68] sm:$0xff]  ;;  %v295_v31 = vld [vmem:[#allocation8 + $0x70] sm:$0xff]  ;;  %v1032_v33 = vpack.c.bf16 %v290_v26, %v287_v25 }
  0x60   :  { %983 = vmatprep.subr.bf16.mxu0 %v982_v51  ;;  %1015 = vmatprep.subr.bf16.mxu1 %v1014_v54  ;;  %v298_v32 = vld [vmem:[#allocation8 + $0x88] sm:$0xff]  ;;  %v1034_v34 = vpack.c.bf16 %v297_v30, %v294_v29  ;;  %v293_v35 = vld [vmem:[#allocation8 + $0x60] sm:$0xff]  ;;  %v296_v36 = vld [vmem:[#allocation8 + $0x78] sm:$0xff] }
  0x61   :  { %v1066_v37 = vpack.c.bf16 %v298_v32, %v295_v31  ;;  %v300_v38 = vld [vmem:[#allocation8 + $0x98] sm:$0xff]  ;;  %v303_v39 = vld [vmem:[#allocation8 + $0xb0] sm:$0xff]  ;;  %v301_v40 = vld [vmem:[#allocation8 + $0xa0] sm:$0xff]  ;;  %v1036_v42 = vpack.c.bf16 %v296_v36, %v293_v35 }
  0x62   :  { %v304_v41 = vld [vmem:[#allocation8 + $0xb8] sm:$0xff]  ;;  %v1038_v43 = vpack.c.bf16 %v303_v39, %v300_v38  ;;  %v299_v44 = vld [vmem:[#allocation8 + $0x90] sm:$0xff]  ;;  %v302_v45 = vld [vmem:[#allocation8 + $0xa8] sm:$0xff] }
  0x63   :  { %985 = vmatpush1.bf16.msra.mxu0 %v984_v59  ;;  %1017 = vmatpush3.bf16.msra.mxu1 %v1014_v54  ;;  %v1070_v46 = vpack.c.bf16 %v304_v41, %v301_v40  ;;  %v306_v47 = vld [vmem:[#allocation8 + $0xc8] sm:$0xff]  ;;  %v309_v48 = vld [vmem:[#allocation8 + $0xe0] sm:$0xff]  ;;  %v307_v49 = vld [vmem:[#allocation8 + $0xd0] sm:$0xff]  ;;  %v1040_v52 = vpack.c.bf16 %v302_v45, %v299_v44 }
  0x64   :  { %987 = vmatprep.subr.bf16.mxu0 %v986_v60  ;;  %1019 = vmatprep.subr.bf16.mxu1 %v1018_v63  ;;  %v310_v51 = vld [vmem:[#allocation8 + $0xe8] sm:$0xff]  ;;  %v1042_v53 = vpack.c.bf16 %v309_v48, %v306_v47  ;;  %v305_v54 = vld [vmem:[#allocation8 + $0xc0] sm:$0xff]  ;;  %v308_v55 = vld [vmem:[#allocation8 + $0xd8] sm:$0xff] }
  0x65   :  { %v1074_v56 = vpack.c.bf16 %v310_v51, %v307_v49  ;;  %v312_v57 = vld [vmem:[#allocation8 + $0xf8] sm:$0xff]  ;;  %v315_v58 = vld [vmem:[#allocation8 + $0x110] sm:$0xff]  ;;  %v313_v59 = vld [vmem:[#allocation8 + $0x100] sm:$0xff]  ;;  %v1044_v61 = vpack.c.bf16 %v308_v55, %v305_v54 }
  0x66   :  { %v316_v60 = vld [vmem:[#allocation8 + $0x118] sm:$0xff]  ;;  %v1046_v62 = vpack.c.bf16 %v315_v58, %v312_v57  ;;  %v314_v1 = vld [vmem:[#allocation8 + $0x108] sm:$0xff]  ;;  %v321_v4 = vld [vmem:[#allocation8 + $0x140] sm:$0xff] }
  0x67   :  { %989 = vmatpush1.bf16.msra.mxu0 %v988_v5  ;;  %1021 = vmatpush3.bf16.msra.mxu1 %v1018_v63  ;;  %v311_v63 = vld [vmem:[#allocation8 + $0xf0] sm:$0xff]  ;;  %v1078_v2 = vpack.c.bf16 %v316_v60, %v313_v59  ;;  %v318_v3 = vld [vmem:[#allocation8 + $0x128] sm:$0xff]  ;;  %v320_v10 = vld [vmem:[#allocation8 + $0x138] sm:$0xff] }
  0x68   :  { %991 = vmatprep.subr.bf16.mxu0 %v990_v6  ;;  %1023 = vmatprep.subr.bf16.mxu1 %v1022_v9  ;;  %v319_v5 = vld [vmem:[#allocation8 + $0x130] sm:$0xff]  ;;  %v322_v6 = vld [vmem:[#allocation8 + $0x148] sm:$0xff]  ;;  %v1048_v7 = vpack.c.bf16 %v314_v1, %v311_v63  ;;  %v1050_v8 = vpack.c.bf16 %v321_v4, %v318_v3  ;;  %v324_v12 = vld [vmem:[#allocation8 + $0x158] sm:$0xff] }
  0x69   :  { %v1082_v11 = vpack.c.bf16 %v322_v6, %v319_v5  ;;  %v327_v13 = vld [vmem:[#allocation8 + $0x170] sm:$0xff]  ;;  %v326_v19 = vld [vmem:[#allocation8 + $0x168] sm:$0xff]  ;;  %v547_v22 = vld [vmem:[#allocation9 + $0x80] sm:$0xff] }
  0x6a   :  { %v1054_v17 = vpack.c.bf16 %v327_v13, %v324_v12  ;;  %v563_v25 = vld [vmem:[#allocation9 + $0x100] sm:$0xff]  ;;  %v532_v29 = vld [vmem:[#allocation9 + $0x8] sm:$0xff]  ;;  %v549_v32 = vld [vmem:[#allocation9 + $0x90] sm:$0xff] }
  0x6b   :  { %993 = vmatpush1.bf16.msra.mxu0 %v992_v14  ;;  %1025 = vmatpush3.bf16.msra.mxu1 %v1022_v9  ;;  %v317_v9 = vld [vmem:[#allocation8 + $0x120] sm:$0xff]  ;;  %v533_v35 = vld [vmem:[#allocation9 + $0x10] sm:$0xff]  ;;  %v552_v39 = vld [vmem:[#allocation9 + $0xa8] sm:$0xff] }
  0x6c   :  { %1027 = vmatprep.subr.bf16.mxu0 %v1026_v15  ;;  %1059 = vmatprep.subr.bf16.mxu1 %v1058_v18  ;;  %v325_v14 = vld [vmem:[#allocation8 + $0x160] sm:$0xff]  ;;  %v328_v15 = vld [vmem:[#allocation8 + $0x178] sm:$0xff]  ;;  %v1052_v16 = vpack.c.bf16 %v320_v10, %v317_v9  ;;  %v536_v44 = vld [vmem:[#allocation9 + $0x28] sm:$0xff] }
  0x6d   :  { %v1086_v20 = vpack.c.bf16 %v328_v15, %v325_v14  ;;  %v551_v38 = vld [vmem:[#allocation9 + $0xa0] sm:$0xff]  ;;  %v553_v47 = vld [vmem:[#allocation9 + $0xb0] sm:$0xff]  ;;  %v554_v48 = vld [vmem:[#allocation9 + $0xb8] sm:$0xff] }
  0x6e   :  { %194 = vmatmul.mubr.f32.vlgmr.msra.gmra.mrb[0].mxu0 %v1409_v50  ;;  %890 = vmatmul.mubr.f32.vlgmr.msra.gmra.mrb[0].mxu1 %v1412_v24  ;;  %v567_v40 = vld [vmem:[#allocation9 + $0x120] sm:$0xff]  ;;  %v1098_v41 = vpack.c.bf16 %v552_v39, %v551_v38  ;;  %v569_v49 = vld [vmem:[#allocation9 + $0x130] sm:$0xff]  ;;  %v1102_v51 = vpack.c.bf16 %v554_v48, %v553_v47  ;;  %v538_v54 = vld [vmem:[#allocation9 + $0x38] sm:$0xff] }
  0x6f   :  { %1029 = vmatpush1.bf16.msra.mxu0 %v1028_v23  ;;  %1061 = vmatpush3.bf16.msra.mxu1 %v1058_v18  ;;  %v323_v18 = vld [vmem:[#allocation8 + $0x150] sm:$0xff]  ;;  %v548_v23 = vld [vmem:[#allocation9 + $0x88] sm:$0xff]  ;;  %v555_v57 = vld [vmem:[#allocation9 + $0xc0] sm:$0xff] }
  0x70   :  { %199 = vmatprep.mubr.f32.mxu0 %v1314_v0  ;;  %1031 = vmatprep.subr.bf16.mxu0 %v1030_v27  ;;  %v1056_v21 = vpack.c.bf16 %v326_v19, %v323_v18  ;;  %v1090_v26 = vpack.c.bf16 %v548_v23, %v547_v22  ;;  %v564_v27 = vld [vmem:[#allocation9 + $0x108] sm:$0xff]  ;;  %v571_v59 = vld [vmem:[#allocation9 + $0x140] sm:$0xff]  ;;  %v557_v3 = vld [vmem:[#allocation9 + $0xd0] sm:$0xff] }
  0x71   :  { %1063 = vmatprep.subr.bf16.mxu1 %v1062_v28  ;;  %924 = vmatprep.mubr.f32.mxu1 %v1409_v50  ;;  %v1122_v30 = vpack.c.bf16 %v564_v27, %v563_v25  ;;  %v556_v58 = vld [vmem:[#allocation9 + $0xc8] sm:$0xff]  ;;  %v558_v4 = vld [vmem:[#allocation9 + $0xd8] sm:$0xff]  ;;  %v573_v5 = vld [vmem:[#allocation9 + $0x150] sm:$0xff] }
  0x72   :  { %200 = vmatmul.mubr.f32.gmra.mrb[2].mxu0 %v1412_v24  ;;  %v1106_v60 = vpack.c.bf16 %v556_v58, %v555_v57  ;;  %v540_v63 = vld [vmem:[#allocation9 + $0x48] sm:$0xff]  ;;  %v1110_v6 = vpack.c.bf16 %v558_v4, %v557_v3  ;;  %v542_v9 = vld [vmem:[#allocation9 + $0x58] sm:$0xff]  ;;  %v559_v12 = vld [vmem:[#allocation9 + $0xe0] sm:$0xff] }
  0x73   :  { %1033 = vmatpush1.bf16.msra.mxu0 %v1032_v33  ;;  %393 = vmatprep.mubr.f32.mxu0 %v1314_v0  ;;  %v565_v33 = vld [vmem:[#allocation9 + $0x110] sm:$0xff]  ;;  %v560_v13 = vld [vmem:[#allocation9 + $0xe8] sm:$0xff]  ;;  %v575_v14 = vld [vmem:[#allocation9 + $0x160] sm:$0xff] }
  0x74   :  { %1065 = vmatpush3.bf16.msra.mxu1 %v1062_v28  ;;  %1035 = vmatprep.subr.bf16.mxu0 %v1034_v34  ;;  %v531_v28 = vld [vmem:[#allocation9] sm:$0xff]  ;;  %v1114_v15 = vpack.c.bf16 %v560_v13, %v559_v12  ;;  %v544_v18 = vld [vmem:[#allocation9 + $0x68] sm:$0xff]  ;;  %v562_v22 = vld [vmem:[#allocation9 + $0xf8] sm:$0xff] }
  0x75   :  { %1067 = vmatprep.subr.bf16.mxu1 %v1066_v37  ;;  %v1092_v31 = vpack.c.bf16 %v532_v29, %v531_v28  ;;  %v577_v23 = vld [vmem:[#allocation9 + $0x170] sm:$0xff]  ;;  %v546_v28 = vld [vmem:[#allocation9 + $0x78] sm:$0xff] }
  0x76   :  { %v545_v27 = vld [vmem:[#allocation9 + $0x70] sm:$0xff] }
  0x77   :  { %1037 = vmatpush1.bf16.msra.mxu0 %v1036_v42  ;;  %v568_v42 = vld [vmem:[#allocation9 + $0x128] sm:$0xff] }
  0x78   :  { %1069 = vmatpush3.bf16.msra.mxu1 %v1066_v37  ;;  %1039 = vmatprep.subr.bf16.mxu0 %v1038_v43  ;;  %v535_v43 = vld [vmem:[#allocation9 + $0x20] sm:$0xff]  ;;  %v1130_v45 = vpack.c.bf16 %v568_v42, %v567_v40 }
  0x79   :  { %1071 = vmatprep.subr.bf16.mxu1 %v1070_v46 }
  0x7b   :  { %1041 = vmatpush1.bf16.msra.mxu0 %v1040_v52  ;;  %v570_v52 = vld [vmem:[#allocation9 + $0x138] sm:$0xff] }
  0x7c   :  { %1073 = vmatpush3.bf16.msra.mxu1 %v1070_v46  ;;  %1043 = vmatprep.subr.bf16.mxu0 %v1042_v53  ;;  %v1100_v46 = vpack.c.bf16 %v536_v44, %v535_v43  ;;  %v537_v53 = vld [vmem:[#allocation9 + $0x30] sm:$0xff]  ;;  %v1134_v55 = vpack.c.bf16 %v570_v52, %v569_v49 }
  0x7d   :  { %1075 = vmatprep.subr.bf16.mxu1 %v1074_v56 }
  0x7f   :  { %1045 = vmatpush1.bf16.msra.mxu0 %v1044_v61  ;;  %v572_v61 = vld [vmem:[#allocation9 + $0x148] sm:$0xff] }
  0x80   :  { %1077 = vmatpush3.bf16.msra.mxu1 %v1074_v56  ;;  %1047 = vmatprep.subr.bf16.mxu0 %v1046_v62  ;;  %v1104_v56 = vpack.c.bf16 %v538_v54, %v537_v53  ;;  %v539_v62 = vld [vmem:[#allocation9 + $0x40] sm:$0xff]  ;;  %v1138_v1 = vpack.c.bf16 %v572_v61, %v571_v59 }
  0x81   :  { %1079 = vmatprep.subr.bf16.mxu1 %v1078_v2 }
  0x83   :  { %1049 = vmatpush1.bf16.msra.mxu0 %v1048_v7  ;;  %v574_v7 = vld [vmem:[#allocation9 + $0x158] sm:$0xff] }
  0x84   :  { %1081 = vmatpush3.bf16.msra.mxu1 %v1078_v2  ;;  %1051 = vmatprep.subr.bf16.mxu0 %v1050_v8  ;;  %v1108_v2 = vpack.c.bf16 %v540_v63, %v539_v62  ;;  %v541_v8 = vld [vmem:[#allocation9 + $0x50] sm:$0xff]  ;;  %v1142_v10 = vpack.c.bf16 %v574_v7, %v573_v5 }
  0x85   :  { %1083 = vmatprep.subr.bf16.mxu1 %v1082_v11 }
  0x87   :  { %1053 = vmatpush1.bf16.msra.mxu0 %v1052_v16  ;;  %v576_v16 = vld [vmem:[#allocation9 + $0x168] sm:$0xff] }
  0x88   :  { %1085 = vmatpush3.bf16.msra.mxu1 %v1082_v11  ;;  %1055 = vmatprep.subr.bf16.mxu0 %v1054_v17  ;;  %v1112_v11 = vpack.c.bf16 %v542_v9, %v541_v8  ;;  %v543_v17 = vld [vmem:[#allocation9 + $0x60] sm:$0xff]  ;;  %v1146_v19 = vpack.c.bf16 %v576_v16, %v575_v14 }
  0x89   :  { %1087 = vmatprep.subr.bf16.mxu1 %v1086_v20 }
  0x8b   :  { %1057 = vmatpush1.bf16.msra.mxu0 %v1056_v21  ;;  %v561_v21 = vld [vmem:[#allocation9 + $0xf0] sm:$0xff] }
  0x8c   :  { %1089 = vmatpush3.bf16.msra.mxu1 %v1086_v20  ;;  %1091 = vmatprep.subr.bf16.mxu0 %v1090_v26  ;;  %v1116_v20 = vpack.c.bf16 %v544_v18, %v543_v17  ;;  %v1118_v25 = vpack.c.bf16 %v562_v22, %v561_v21  ;;  %v578_v26 = vld [vmem:[#allocation9 + $0x178] sm:$0xff] }
  0x8d   :  { %1123 = vmatprep.subr.bf16.mxu1 %v1122_v30  ;;  %v1150_v29 = vpack.c.bf16 %v578_v26, %v577_v23 }
  0x8e   :  { %394 = vmatmul.mubr.f32.vlgmr.msra.gmra.mrb[4].mxu0 %v1409_v50  ;;  %v550_v50 = vld [vmem:[#allocation9 + $0x98] sm:$0xff] }
  0x8f   :  { %925 = vmatmul.mubr.f32.vlgmr.msra.gmra.mrb[2].mxu1 %v1412_v24  ;;  %399 = vmatprep.mubr.f32.mxu0 %v1314_v0  ;;  %v1094_v34 = vpack.c.bf16 %v550_v50, %v549_v32  ;;  %v566_v0 = vld [vmem:[#allocation9 + $0x118] sm:$0xff] }
  0x90   :  { %1093 = vmatpush3.bf16.msra.mxu0 %v1092_v31  ;;  %1125 = vmatpush3.bf16.msra.mxu1 %v1122_v30  ;;  %v1126_v36 = vpack.c.bf16 %v566_v0, %v565_v33  ;;  %v1120_v30 = vpack.c.bf16 %v546_v28, %v545_v27 }
  0x91   :  { %1095 = vmatprep.subr.bf16.mxu0 %v1094_v34 }
  0x92   :  { %400 = vmatmul.mubr.f32.gmra.mrb[6].mxu0 %v1412_v24  ;;  %v534_v24 = vld [vmem:[#allocation9 + $0x18] sm:$0xff]  ;;  %1127 = vmatprep.subr.bf16.mxu1 %v1126_v36 }
  0x93   :  { %v1096_v37 = vpack.c.bf16 %v534_v24, %v533_v35 }
  0x94   :  { %1129 = vmatpush3.bf16.msra.mxu1 %v1126_v36 }
  0x95   :  { %1097 = vmatpush3.bf16.msra.mxu0 %v1096_v37  ;;  %1131 = vmatprep.subr.bf16.mxu1 %v1130_v45 }
  0x96   :  { %1099 = vmatprep.subr.bf16.mxu0 %v1098_v41 }
  0x98   :  { %1133 = vmatpush3.bf16.msra.mxu1 %v1130_v45 }
  0x99   :  { %1101 = vmatpush3.bf16.msra.mxu0 %v1100_v46  ;;  %1135 = vmatprep.subr.bf16.mxu1 %v1134_v55 }
  0x9a   :  { %1103 = vmatprep.subr.bf16.mxu0 %v1102_v51 }
  0x9c   :  { %1137 = vmatpush3.bf16.msra.mxu1 %v1134_v55 }
  0x9d   :  { %1105 = vmatpush3.bf16.msra.mxu0 %v1104_v56  ;;  %1139 = vmatprep.subr.bf16.mxu1 %v1138_v1 }
  0x9e   :  { %1107 = vmatprep.subr.bf16.mxu0 %v1106_v60 }
  0xa0   :  { %1141 = vmatpush3.bf16.msra.mxu1 %v1138_v1 }
  0xa1   :  { %1109 = vmatpush3.bf16.msra.mxu0 %v1108_v2  ;;  %1143 = vmatprep.subr.bf16.mxu1 %v1142_v10 }
  0xa2   :  { %1111 = vmatprep.subr.bf16.mxu0 %v1110_v6 }
  0xa4   :  { %1145 = vmatpush3.bf16.msra.mxu1 %v1142_v10 }
  0xa5   :  { %1113 = vmatpush3.bf16.msra.mxu0 %v1112_v11  ;;  %1147 = vmatprep.subr.bf16.mxu1 %v1146_v19 }
  0xa6   :  { %1115 = vmatprep.subr.bf16.mxu0 %v1114_v15 }
  0xa8   :  { %1149 = vmatpush3.bf16.msra.mxu1 %v1146_v19 }
  0xa9   :  { %1117 = vmatpush3.bf16.msra.mxu0 %v1116_v20  ;;  %1151 = vmatprep.subr.bf16.mxu1 %v1150_v29 }
  0xaa   :  { %1119 = vmatprep.subr.bf16.mxu0 %v1118_v25 }
  0xac   :  { %1153 = vmatpush3.bf16.msra.mxu1 %v1150_v29 }
  0xad   :  { %1121 = vmatpush3.bf16.msra.mxu0 %v1120_v30 }
 0x141   :  { %v195_v31 = vpop.f32.mrb[0].mxu0  ;;  %v891_v50 = vpop.f32.mrb[0].mxu1 }
 0x142   :  { %v759_v32 = vmul.f32 -1.442695, %v195_v31  ;;  %v197_v33 = vpop.f32.mrb[1].mxu0  ;;  %v764_v34 = vmul.f32 -1.442695, %v891_v50  ;;  %v272_v35 = vpop.f32.mrb[1].mxu1 }
 0x143   :  { %v760_v0 = vmul.f32 -1.442695, %v197_v33  ;;  %v761_v24 = vmul.f32 -1.442695, %v272_v35 }
 0x144   :  { %1164 = vpow2.f32 %v759_v32 }
 0x145   :  { %1166 = vpow2.f32 %v764_v34  ;;  %v201_v36 = vpop.f32.mrb[2].mxu0 }
 0x146   :  { %1168 = vpow2.f32 %v760_v0  ;;  %v762_v37 = vmul.f32 -1.442695, %v201_v36  ;;  %v203_v38 = vpop.f32.mrb[3].mxu0 }
 0x147   :  { %1170 = vpow2.f32 %v761_v24  ;;  %v763_v39 = vmul.f32 -1.442695, %v203_v38 }
 0x148   :  { %1172 = vpow2.f32 %v762_v37 }
 0x149   :  { %1174 = vpow2.f32 %v763_v39 }
 0x14e   :  { %v1165_v40 = vpop.eup %1164 }
 0x14f   :  { %v1167_v41 = vpop.eup %1166  ;;  %v499_v42 = vadd.f32 1.0, %v1165_v40 }
 0x150   :  { %v1169_v43 = vpop.eup %1168  ;;  %v504_v44 = vadd.f32 1.0, %v1167_v41 }
 0x151   :  { %v1171_v45 = vpop.eup %1170  ;;  %v500_v46 = vadd.f32 1.0, %v1169_v43  ;;  %1176 = vrcp.f32 %v499_v42 }
 0x152   :  { %v1173_v47 = vpop.eup %1172  ;;  %v501_v48 = vadd.f32 1.0, %v1171_v45  ;;  %1178 = vrcp.f32 %v504_v44 }
 0x153   :  { %v1175_v49 = vpop.eup %1174  ;;  %v502_v51 = vadd.f32 1.0, %v1173_v47  ;;  %1180 = vrcp.f32 %v500_v46 }
 0x154   :  { %v503_v52 = vadd.f32 1.0, %v1175_v49  ;;  %1182 = vrcp.f32 %v501_v48 }
 0x155   :  { %1184 = vrcp.f32 %v502_v51 }
 0x156   :  { %1186 = vrcp.f32 %v503_v52 }
 0x15b   :  { %v1177_v53 = vpop.eup %1176 }
 0x15c   :  { %v1179_v54 = vpop.eup %1178  ;;  %v517_v57 = vmul.f32 %v1177_v53, %v195_v31 }
 0x15d   :  { %v1181_v55 = vpop.eup %1180  ;;  %v522_v59 = vmul.f32 %v1179_v54, %v891_v50 }
 0x15e   :  { %v1183_v56 = vpop.eup %1182  ;;  %v518_v60 = vmul.f32 %v1181_v55, %v197_v33 }
 0x15f   :  { %v1185_v58 = vpop.eup %1184  ;;  %v519_v63 = vmul.f32 %v1183_v56, %v272_v35 }
 0x160   :  { %v1187_v62 = vpop.eup %1186  ;;  %v520_v7 = vmul.f32 %v1185_v58, %v201_v36 }
 0x161   :  { %v395_v61 = vpop.f32.mrb[4].mxu0  ;;  %v521_v9 = vmul.f32 %v1187_v62, %v203_v38 }
 0x162   :  { %v523_v1 = vmul.f32 %v517_v57, %v395_v61  ;;  %v926_v2 = vpop.f32.mrb[2].mxu1  ;;  %v397_v3 = vpop.f32.mrb[5].mxu0 }
 0x163   :  { %v528_v4 = vmul.f32 %v926_v2, %v522_v59  ;;  %v524_v5 = vmul.f32 %v518_v60, %v397_v3  ;;  %v472_v6 = vpop.f32.mrb[3].mxu1 }
 0x164   :  { %v525_v8 = vmul.f32 %v519_v63, %v472_v6 }
 0x165   :  { %v401_v10 = vpop.f32.mrb[6].mxu0  ;;  %643 = vmatprep.mubr.f32.mxu0 %v524_v5 }
 0x166   :  { %v526_v11 = vmul.f32 %v520_v7, %v401_v10  ;;  %959 = vmatprep.mubr.f32.mxu1 %v525_v8  ;;  %v403_v12 = vpop.f32.mrb[7].mxu0  ;;  %644 = vmatmul.mubr.f32.vlgmr.msra.gmra.mrb[8].mxu0 %v523_v1 }
 0x167   :  { %v527_v13 = vmul.f32 %v521_v9, %v403_v12  ;;  %960 = vmatmul.mubr.f32.vlgmr.msra.gmra.mrb[4].mxu1 %v528_v4 }
 0x169   :  { %648 = vmatprep.mubr.f32.mxu0 %v527_v13 }
 0x16a   :  { %649 = vmatmul.mubr.f32.gmra.mrb[10].mxu0 %v526_v11 }
 0x239   :  { %v833_v14 = vpop.f32.mrb[8].mxu0 }
 0x23a   :  { %v961_v15 = vpop.f32.mrb[4].mxu1  ;;  %v834_v16 = vpop.f32.mrb[9].mxu0 }
 0x23b   :  { %v835_v17 = vadd.f32 %v834_v16, %v833_v14  ;;  %v720_v18 = vpop.f32.mrb[5].mxu1 }
 0x23d   :  { %v721_v19 = vadd.f32 %v835_v17, %v720_v18  ;;  %v836_v20 = vpop.f32.mrb[10].mxu0 }
 0x23e   :  { %v837_v21 = vpop.f32.mrb[11].mxu0 }
 0x23f   :  { %738 = vst [vmem:[#allocation11] sm:$0xff] %v721_v19  ;;  %v838_v22 = vadd.f32 %v837_v21, %v836_v20 }
 0x241   :  { %v726_v23 = vadd.f32 %v961_v15, %v838_v22 }
 0x243   :  { %739 = vst [vmem:[#allocation11 + $0x8] sm:$0xff] %v726_v23 }
 0x244   :  { %1287 = shalt.err (!%p1284_p8)
}
 0x245   :  { %s1288_s17 = scalar_lea.hbm %s1443_s4, 256 }
 0x246   :  { %p1289_p9 = scmp.ne.s32.totalorder %s1443_s4, %s1288_s17  ;;  %p1292_p10 = scmp.lt.u32.totalorder %s1288_s17, %s1443_s4 }
 0x248   :  { %p1294_p11 = pnand %p1292_p10, %p1289_p9 }
 0x24a   :  { %1297 = shalt.err (!%p1294_p11)
}
 0x24b   :  { %751 = dma.vmem_to_hbm [thread:$0]  %s746_s26, 256, %s1443_s4, [#allocation5], %s1310_s1, %s1310_s1, %s1311_s13  }
 0x24c   :  { %1304 = dma.done.wait [#allocation5], 256  }
 0x24d   :  { %1305 = vsyncadd [#allocation5], 4294967040 }
 0x24e   :  { %755 = vsyncpa [#allocation4], 1 }
 0x24f   :  { %756 = vsyncpa [#allocation7], 1 }
 0x250   :  { %757 = vsyncpa [#allocation10], 1 }
 0x251   :  { %758 = vsyncpa [#allocation5], 1 }

</bundles_post_ra>
